<compile_context>
chip_gen: v5e
topology: v5e:2x2
jax: 0.10.0
libtpu: 0.0.40
codegen_flags: <defaults>
</compile_context>

<pallas_src>
import functools

import jax
import jax.numpy as jnp
from jax.experimental import pallas as pl
from jax.experimental.pallas import tpu as pltpu


def _simplex_proj_kernel(x_ref, o_ref, *, beta, valid_n):
    # x_ref / o_ref: (row_tile, n_block) block in VMEM.
    x = x_ref[...].astype(jnp.float32)
    num = jnp.exp(x)                                    # EUP

    if valid_n is not None:
        # The lane axis of the block was rounded up to a multiple of 128;
        # lanes >= valid_n of the edge block contain undefined data.  Zero
        # them so the row sum is exact (and so the discarded output lanes
        # hold clean zeros instead of garbage).
        lane = jax.lax.broadcasted_iota(jnp.int32, num.shape, num.ndim - 1)
        num = jnp.where(lane < valid_n, num, 0.0)

    s = jnp.sum(num, axis=-1, keepdims=True)            # XLU lane reduction

    # Per-row inverse denominator (shape (row_tile, 1)); beta is a
    # compile-time Python float, so branch in Python.
    if beta == 0.0:
        inv = jnp.ones_like(s)
    elif beta == 0.5:
        inv = jax.lax.rsqrt(s)                           # EUP
    elif beta == 1.0:
        inv = 1.0 / s                                    # exact, per-row only
    else:
        inv = jnp.exp(-beta * jnp.log(s))                # general s**(-beta)

    # Broadcast multiply (VPU) instead of a full-tile divide.
    o_ref[...] = (num * inv).astype(o_ref.dtype)


def _sublane_multiple(dtype) -> int:
    itemsize = jnp.dtype(dtype).itemsize
    if itemsize >= 4:
        return 8
    if itemsize == 2:
        return 16
    return 32


def _vmem_budgets() -> tuple[int, int]:
    """(block_budget_bytes, vmem_limit_bytes), generation-gated."""
    cap = None
    try:
        info = pltpu.get_tpu_info()
        cap = int(getattr(info, "vmem_capacity_bytes", 0)) or None
    except Exception:
        cap = None
    if cap is not None and cap >= 128 * 1024 * 1024:
        # v5e / v6e: 128 MiB physical VMEM -> go big.
        vmem_limit = 64 * 1024 * 1024
    else:
        # v7x (64 MiB physical) or unknown -> stay conservative.
        vmem_limit = 32 * 1024 * 1024
    block_budget = (vmem_limit * 3) // 4
    return block_budget, vmem_limit


def _choose_row_tile(rows: int, n_block: int, dtype, budget: int) -> int:
    """Largest row tile whose double-buffered I/O + f32 temps fit the budget."""
    sub = _sublane_multiple(dtype)
    itemsize = jnp.dtype(dtype).itemsize
    # Per-row VMEM bytes: input + output blocks, each double-buffered, plus a
    # rough allowance for the f32 intermediates inside the kernel.
    per_row = 4 * n_block * itemsize + 8 * n_block
    cap = max(sub, budget // max(per_row, 1))
    cap = max(sub, (cap // sub) * sub)
    rows_up = ((rows + sub - 1) // sub) * sub
    return min(cap, rows_up)


def simplex_proj(scores, beta: float = 0.5, row_tile: int | None = None):
    """Pallas equivalent of Module.forward(scores)."""
    orig_shape = scores.shape
    n = orig_shape[-1]
    rows = 1
    for d in orig_shape[:-1]:
        rows *= d
    x2d = scores.reshape(rows, n)
    dtype = scores.dtype
    itemsize = jnp.dtype(dtype).itemsize

    # Lane-dense block: round the lane axis up to a multiple of 128 so vector
    # stores into the output block are unmasked.  The reduction axis is never
    # split, so the lane block index is always 0.
    LANE = 128
    n_block = ((n + LANE - 1) // LANE) * LANE
    valid_n = None if n_block == n else n

    sub = _sublane_multiple(dtype)
    block_budget, vmem_limit = _vmem_budgets()
    if row_tile is None:
        row_tile = _choose_row_tile(rows, n_block, dtype, block_budget)
    else:
        row_tile = max(sub, (row_tile // sub) * sub)

    # Ragged last row block is handled by Pallas edge-block semantics: no
    # wrapper pad / slice (they each cost a full extra HBM round-trip).
    num_tiles = pl.cdiv(rows, row_tile)

    cost = pl.CostEstimate(
        flops=2 * rows * n,
        transcendentals=rows * (n + 2),
        bytes_accessed=2 * rows * n * itemsize,
    )

    out2d = pl.pallas_call(
        functools.partial(_simplex_proj_kernel, beta=float(beta), valid_n=valid_n),
        out_shape=jax.ShapeDtypeStruct((rows, n), dtype),
        grid_spec=pltpu.PrefetchScalarGridSpec(
            num_scalar_prefetch=0,
            grid=(num_tiles,),
            in_specs=[pl.BlockSpec((row_tile, n_block), lambda i: (i, 0))],
            out_specs=pl.BlockSpec((row_tile, n_block), lambda i: (i, 0)),
        ),
        compiler_params=pltpu.CompilerParams(
            dimension_semantics=("parallel",),   # shards rows across TCs on v7x
            vmem_limit_bytes=vmem_limit,
        ),
        cost_estimate=cost,
    )(x2d)

    return out2d.reshape(orig_shape)


def _reference(scores, beta: float = 0.5):
    num = jnp.exp(scores)
    denom = jnp.sum(num, axis=-1, keepdims=True) ** beta
    return num / denom


if __name__ == "__main__":
    key = jax.random.PRNGKey(0)

    # attention-score-like shape: (batch, heads, q_len, k_len)
    scores = jax.random.normal(key, (2, 4, 8, 128), dtype=jnp.float32)
    out = simplex_proj(scores, beta=0.5)
    out = jax.block_until_ready(out)
    ref = _reference(scores, beta=0.5)
    assert out.shape == scores.shape
    assert out.dtype == scores.dtype
    assert jnp.allclose(out, ref, atol=1e-5, rtol=1e-5)

    # Non-divisible row count and N not a multiple of 128: exercises the
    # ragged row edge block and the lane-padded (lane-dense) block path.
    scores2 = jax.random.normal(jax.random.PRNGKey(1), (3, 7, 96), dtype=jnp.float32)
    out2 = jax.block_until_ready(simplex_proj(scores2, beta=0.5))
    ref2 = _reference(scores2, beta=0.5)
    assert jnp.allclose(out2, ref2, atol=1e-5, rtol=1e-5)

    # beta = 1.0 (plain softmax-like normalization) uses the exact reciprocal.
    out3 = jax.block_until_ready(simplex_proj(scores, beta=1.0))
    ref3 = _reference(scores, beta=1.0)
    assert jnp.allclose(out3, ref3, atol=1e-5, rtol=1e-5)

    print("KERNEL_OK")
</pallas_src>

<mosaic_0001>
module attributes {stable_mosaic.version = 11 : i64} {
  func.func @_simplex_proj_kernel(%arg0: i32, %arg1: memref<64x128xf32, #tpu.memory_space<vmem>>, %arg2: memref<64x128xf32, #tpu.memory_space<vmem>>) attributes {dimension_semantics = [#tpu.dimension_semantics<parallel>], iteration_bounds = array<i64: 1>, scalar_prefetch = 0 : i64, scratch_operands = 0 : i64, tpu.core_type = #tpu.core_type<tc>, window_params = [{transform_indices = @transform_0, window_bounds = array<i64: 64, 128>}, {transform_indices = @transform_1, window_bounds = array<i64: 64, 128>}]} {
    %c0 = arith.constant 0 : index
    %c0_0 = arith.constant 0 : index
    %0 = vector.load %arg1[%c0, %c0_0] : memref<64x128xf32, #tpu.memory_space<vmem>>, vector<64x128xf32>
    %1 = math.exp %0 : vector<64x128xf32>
    %cst = arith.constant dense<0.000000e+00> : vector<64xf32>
    %2 = vector.multi_reduction <add>, %1, %cst [1] : vector<64x128xf32> to vector<64xf32>
    %3 = vector.shape_cast %2 : vector<64xf32> to vector<64x1xf32>
    %4 = math.rsqrt %3 : vector<64x1xf32>
    %5 = vector.broadcast %4 : vector<64x1xf32> to vector<64x128xf32>
    %6 = arith.mulf %1, %5 : vector<64x128xf32>
    %c0_1 = arith.constant 0 : index
    %c0_2 = arith.constant 0 : index
    %7 = vector.load %arg2[%c0_1, %c0_2] : memref<64x128xf32, #tpu.memory_space<vmem>>, vector<64x128xf32>
    tpu.vector_store %arg2[%c0_1, %c0_2], %6 {strides = array<i32>} : memref<64x128xf32, #tpu.memory_space<vmem>>, vector<64x128xf32>,
    return
  }
  func.func @transform_0(%arg0: i32) -> (i32, i32) {
    %c0_i32 = arith.constant 0 : i32
    %c0_i32_0 = arith.constant 0 : i32
    return %arg0, %c0_i32 : i32, i32
  }
  func.func @transform_1(%arg0: i32) -> (i32, i32) {
    %c0_i32 = arith.constant 0 : i32
    %c0_i32_0 = arith.constant 0 : i32
    return %arg0, %c0_i32 : i32, i32
  }
}

</mosaic_0001>

<bundles_post_ra>
// kernel: tpu_custom_call.1
= control target key start
LH: loop header
LB: loop body
LE: loop exit
PB: predicated region body
PF: predicated region fallthrough
CT: control target
= control target key end

     0   :  { %6 = vsyncpa [#allocation3], 0  ;;  %s342_s0 = inlined_call_operand.hbm [shape: f32[64,128], index: 0, kind: input, shape index: {}]   ;;  %s343_s1 = inlined_call_operand.hbm [shape: f32[64,128], index: 1, kind: output, shape index: {}]  }
   0x1   :  { %7 = vsyncpa [#allocation4], 0  ;;  %s12_s8 = sshll.u32 %s342_s0, 4  ;;  %s268_s9 = smov [#allocation2]   ;;  %s13_s8 = int_to_ptr.hbm [resolvable:$true] %s12_s8 }
   0x2   :  { %s14_s10 = sshll.u32 %s268_s9, 4  ;;  %s269_s11 = smov 128   ;;  %s15_s10 = int_to_ptr.vmem [resolvable:$true] %s14_s10 }
   0x3   :  { %s270_s12 = smov 8  }
   0x4   :  { %20 = dma.hbm_to_vmem [thread:$0]  %s13_s8, 1024, %s15_s10, [#allocation3], %s269_s11, %s269_s11, %s270_s12  }
   0x5   :  { %264 = dma.done.wait [#allocation3], 1024  }
   0x6   :  { %265 = vsyncadd [#allocation3], 4294966272  ;;  %v29_v0 = vld [vmem:[#allocation2 + $0x20] sm:$0xff]  ;;  %v27_v1 = vld [vmem:[#allocation2 + $0x10] sm:$0xff]  ;;  %s271_s0 = smov [#allocation5]   ;;  %s167_s16 = sshll.u32 %s343_s1, 4  ;;  %s168_s16 = int_to_ptr.hbm [resolvable:$true] %s167_s16 }
   0x7   :  { %v25_v2 = vld [vmem:[#allocation2] sm:$0xff]  ;;  %v41_v3 = vmul.f32 1.442695, %v29_v0  ;;  %v37_v4 = vmul.f32 1.442695, %v27_v1  ;;  %v30_v6 = vld [vmem:[#allocation2 + $0x28] sm:$0xff] }
   0x8   :  { %v33_v5 = vmul.f32 1.442695, %v25_v2  ;;  %v28_v7 = vld [vmem:[#allocation2 + $0x18] sm:$0xff]  ;;  %v26_v8 = vld [vmem:[#allocation2 + $0x8] sm:$0xff]  ;;  %v43_v9 = vmul.f32 1.442695, %v30_v6 }
   0x9   :  { %184 = vpow2.f32 %v41_v3  ;;  %v39_v10 = vmul.f32 1.442695, %v28_v7  ;;  %v35_v11 = vmul.f32 1.442695, %v26_v8  ;;  %v32_v15 = vld [vmem:[#allocation2 + $0x38] sm:$0xff]  ;;  %v31_v16 = vld [vmem:[#allocation2 + $0x30] sm:$0xff] }
   0xa   :  { %186 = vpow2.f32 %v37_v4  ;;  %v47_v17 = vmul.f32 1.442695, %v32_v15  ;;  %v45_v19 = vmul.f32 1.442695, %v31_v16  ;;  %s165_s13 = sshll.u32 %s271_s0, 4  ;;  %s166_s13 = int_to_ptr.vmem [resolvable:$true] %s165_s13 }
   0xb   :  { %188 = vpow2.f32 %v33_v5 }
   0xc   :  { %190 = vpow2.f32 %v43_v9 }
   0xd   :  { %192 = vpow2.f32 %v39_v10 }
   0xe   :  { %194 = vpow2.f32 %v35_v11 }
   0xf   :  { %v288_v12 = vpop.eup %184  ;;  %196 = vpow2.f32 %v47_v17 }
  0x10   :  { %v290_v13 = vpop.eup %186  ;;  %57 = vadd.xlane.f32.xlu2 %v288_v12  ;;  %198 = vpow2.f32 %v45_v19 }
  0x11   :  { %v293_v14 = vpop.eup %188  ;;  %53 = vadd.xlane.f32.xlu1 %v290_v13 }
  0x12   :  { %49 = vadd.xlane.f32.xlu0 %v293_v14  ;;  %v297_v18 = vpop.eup %190 }
  0x13   :  { %v299_v20 = vpop.eup %192 }
  0x14   :  { %v301_v21 = vpop.eup %194 }
  0x15   :  { %v306_v22 = vpop.eup %196 }
  0x16   :  { %v308_v23 = vpop.eup %198 }
  0x18   :  { %59 = vadd.xlane.f32.xlu2 %v297_v18 }
  0x19   :  { %55 = vadd.xlane.f32.xlu1 %v299_v20 }
  0x1a   :  { %51 = vadd.xlane.f32.xlu0 %v301_v21 }
  0x21   :  { %63 = vadd.xlane.f32.xlu1 %v306_v22 }
  0x22   :  { %61 = vadd.xlane.f32.xlu0 %v308_v23 }
  0x83   :  { %v58_v24 = vpop.xlane.xlu2 %57 }
  0x84   :  { %200 = vrsqrt.f32 %v58_v24  ;;  %v54_v25 = vpop.xlane.xlu1 %53  ;;  %vm111_vm0 = vweird.f32 %v58_v24 }
  0x85   :  { %202 = vrsqrt.f32 %v54_v25  ;;  %v50_v26 = vpop.xlane.xlu0 %49  ;;  %vm91_vm5 = vweird.f32 %v54_v25 }
  0x86   :  { %204 = vrsqrt.f32 %v50_v26  ;;  %vm71_vm6 = vweird.f32 %v50_v26 }
  0x8a   :  { %v201_v27 = vpop.eup %200 }
  0x8b   :  { %v203_v28 = vpop.eup %202  ;;  %v106_v29 = vmul.f32 %v201_v27, %v58_v24  ;;  %v312_v30 = vpop.xlane.xlu2 %59  ;;  %vm112_vm1 = vweird.f32 %v201_v27 }
  0x8c   :  { %v205_v31 = vpop.eup %204  ;;  %v86_v32 = vmul.f32 %v203_v28, %v54_v25  ;;  %206 = vrsqrt.f32 %v312_v30  ;;  %v315_v33 = vpop.xlane.xlu1 %55  ;;  %vm92_vm2 = vweird.f32 %v203_v28  ;;  %vm113_vm4 = vmor %vm111_vm0, %vm112_vm1  ;;  %vm121_vm9 = vweird.f32 %v312_v30 }
  0x8d   :  { %v107_v34 = vmul.f32 %v201_v27, %v106_v29  ;;  %v66_v35 = vmul.f32 %v205_v31, %v50_v26  ;;  %208 = vrsqrt.f32 %v315_v33  ;;  %v318_v36 = vpop.xlane.xlu0 %51  ;;  %vm72_vm3 = vweird.f32 %v205_v31  ;;  %vm93_vm7 = vmor %vm91_vm5, %vm92_vm2 }
  0x8e   :  { %v87_v37 = vmul.f32 %v203_v28, %v86_v32  ;;  %210 = vrsqrt.f32 %v318_v36  ;;  %vm73_vm8 = vmor %vm71_vm6, %vm72_vm3  ;;  %vm101_vm14 = vweird.f32 %v315_v33  ;;  %vm81_vm0 = vweird.f32 %v318_v36 }
  0x8f   :  { %v108_v38 = vmul.f32 0.5, %v107_v34  ;;  %v67_v39 = vmul.f32 %v205_v31, %v66_v35 }
  0x90   :  { %v88_v40 = vmul.f32 0.5, %v87_v37 }
  0x91   :  { %v109_v41 = vsub.f32 1.5, %v108_v38  ;;  %v68_v42 = vmul.f32 0.5, %v67_v39 }
  0x92   :  { %v207_v43 = vpop.eup %206  ;;  %v89_v44 = vsub.f32 1.5, %v88_v40 }
  0x93   :  { %v209_v45 = vpop.eup %208  ;;  %v110_v46 = vmul.f32 %v201_v27, %v109_v41  ;;  %v69_v47 = vsub.f32 1.5, %v68_v42  ;;  %v116_v48 = vmul.f32 %v207_v43, %v312_v30  ;;  %vm122_vm10 = vweird.f32 %v207_v43 }
  0x94   :  { %v211_v49 = vpop.eup %210  ;;  %v90_v50 = vmul.f32 %v203_v28, %v89_v44  ;;  %v96_v51 = vmul.f32 %v209_v45, %v315_v33  ;;  %v64_v56 = vpop.xlane.xlu1 %63  ;;  %vm102_vm11 = vweird.f32 %v209_v45  ;;  %vm123_vm13 = vmor %vm121_vm9, %vm122_vm10 }
  0x95   :  { %v114_v52 = vsel %vm113_vm4, %v201_v27, %v110_v46  ;;  %v70_v53 = vmul.f32 %v205_v31, %v69_v47  ;;  %v117_v54 = vmul.f32 %v207_v43, %v116_v48  ;;  %v76_v55 = vmul.f32 %v211_v49, %v318_v36  ;;  %v62_v60 = vpop.xlane.xlu0 %61  ;;  %vm103_vm15 = vmor %vm101_vm14, %vm102_vm11 }
  0x96   :  { %v149_v57 = vmul.f32 %v288_v12, %v114_v52  ;;  %v94_v58 = vsel %vm93_vm7, %v203_v28, %v90_v50  ;;  %v97_v59 = vmul.f32 %v209_v45, %v96_v51  ;;  %212 = vrsqrt.f32 %v64_v56 }
  0x97   :  { %v147_v61 = vmul.f32 %v290_v13, %v94_v58  ;;  %v74_v62 = vsel %vm73_vm8, %v205_v31, %v70_v53  ;;  %v118_v63 = vmul.f32 0.5, %v117_v54  ;;  %v77_v0 = vmul.f32 %v211_v49, %v76_v55 }
  0x98   :  { %157 = vst [vmem:[#allocation5 + $0x20] sm:$0xff] %v149_v57  ;;  %v145_v1 = vmul.f32 %v293_v14, %v74_v62  ;;  %v98_v2 = vmul.f32 0.5, %v97_v59  ;;  %214 = vrsqrt.f32 %v62_v60  ;;  %vm82_vm12 = vweird.f32 %v211_v49 }
  0x99   :  { %155 = vst [vmem:[#allocation5 + $0x10] sm:$0xff] %v147_v61  ;;  %v119_v3 = vsub.f32 1.5, %v118_v63  ;;  %v78_v4 = vmul.f32 0.5, %v77_v0  ;;  %vm83_vm1 = vmor %vm81_vm0, %vm82_vm12  ;;  %vm141_vm4 = vweird.f32 %v64_v56  ;;  %vm131_vm6 = vweird.f32 %v62_v60 }
  0x9a   :  { %153 = vst [vmem:[#allocation5] sm:$0xff] %v145_v1  ;;  %v99_v5 = vsub.f32 1.5, %v98_v2 }
  0x9b   :  { %v120_v6 = vmul.f32 %v207_v43, %v119_v3  ;;  %v79_v7 = vsub.f32 1.5, %v78_v4 }
  0x9c   :  { %v100_v8 = vmul.f32 %v209_v45, %v99_v5  ;;  %v213_v11 = vpop.eup %212 }
  0x9d   :  { %v124_v9 = vsel %vm123_vm13, %v207_v43, %v120_v6  ;;  %v80_v10 = vmul.f32 %v211_v49, %v79_v7  ;;  %v136_v17 = vmul.f32 %v213_v11, %v64_v56  ;;  %vm142_vm2 = vweird.f32 %v213_v11 }
  0x9e   :  { %v150_v12 = vmul.f32 %v297_v18, %v124_v9  ;;  %v104_v13 = vsel %vm103_vm15, %v209_v45, %v100_v8  ;;  %v215_v14 = vpop.eup %214  ;;  %vm143_vm5 = vmor %vm141_vm4, %vm142_vm2 }
  0x9f   :  { %v148_v15 = vmul.f32 %v299_v20, %v104_v13  ;;  %v84_v16 = vsel %vm83_vm1, %v211_v49, %v80_v10  ;;  %v126_v24 = vmul.f32 %v215_v14, %v62_v60  ;;  %v137_v25 = vmul.f32 %v213_v11, %v136_v17 }
  0xa0   :  { %158 = vst [vmem:[#allocation5 + $0x28] sm:$0xff] %v150_v12  ;;  %v146_v19 = vmul.f32 %v301_v21, %v84_v16  ;;  %vm132_vm3 = vweird.f32 %v215_v14 }
  0xa1   :  { %156 = vst [vmem:[#allocation5 + $0x18] sm:$0xff] %v148_v15  ;;  %v127_v26 = vmul.f32 %v215_v14, %v126_v24  ;;  %v138_v27 = vmul.f32 0.5, %v137_v25  ;;  %vm133_vm7 = vmor %vm131_vm6, %vm132_vm3 }
  0xa2   :  { %154 = vst [vmem:[#allocation5 + $0x8] sm:$0xff] %v146_v19 }
  0xa3   :  { %v128_v28 = vmul.f32 0.5, %v127_v26  ;;  %v139_v29 = vsub.f32 1.5, %v138_v27 }
  0xa5   :  { %v129_v18 = vsub.f32 1.5, %v128_v28  ;;  %v140_v30 = vmul.f32 %v213_v11, %v139_v29 }
  0xa7   :  { %v130_v20 = vmul.f32 %v215_v14, %v129_v18  ;;  %v144_v21 = vsel %vm143_vm5, %v213_v11, %v140_v30 }
  0xa8   :  { %v152_v31 = vmul.f32 %v306_v22, %v144_v21 }
  0xa9   :  { %v134_v32 = vsel %vm133_vm7, %v215_v14, %v130_v20 }
  0xaa   :  { %v151_v33 = vmul.f32 %v308_v23, %v134_v32  ;;  %160 = vst [vmem:[#allocation5 + $0x38] sm:$0xff] %v152_v31 }
  0xac   :  { %159 = vst [vmem:[#allocation5 + $0x30] sm:$0xff] %v151_v33 }
  0xad   :  { %173 = dma.vmem_to_hbm [thread:$0]  %s166_s13, 1024, %s168_s16, [#allocation4], %s269_s11, %s269_s11, %s270_s12  }
  0xae   :  { %266 = dma.done.wait [#allocation4], 1024  }
  0xaf   :  { %267 = vsyncadd [#allocation4], 4294966272 }
  0xb0   :  { %178 = vsyncpa [#allocation3], 1 }
  0xb1   :  { %179 = vsyncpa [#allocation4], 1 }

</bundles_post_ra>
